<compile_context>
chip_gen: v5e
topology: v5e:2x2
jax: 0.10.0
libtpu: 0.0.40
codegen_flags: <defaults>
</compile_context>

<pallas_src>
import jax
import jax.numpy as jnp
from jax.experimental import pallas as pl
from jax.experimental.pallas import tpu as pltpu
import numpy as np


# ----------------------------------------------------------------------------
# Kernels
# ----------------------------------------------------------------------------
def _kernel_shortcut(x_ref, w0_ref, b0_ref, w1_ref, b1_ref, ws_ref, o_ref):
    """Projection shortcut, single (rows) grid axis."""
    x = x_ref[...]
    h0 = jnp.maximum(x, 0)                                            # actvn(x)
    net = jnp.dot(h0, w0_ref[...],
                  preferred_element_type=jnp.float32) + b0_ref[...]   # fc_0
    h1 = jnp.maximum(net, 0).astype(w1_ref.dtype)                     # actvn(net)
    dx = jnp.dot(h1, w1_ref[...],
                 preferred_element_type=jnp.float32) + b1_ref[...]    # fc_1
    x_s = jnp.dot(x, ws_ref[...], preferred_element_type=jnp.float32)  # shortcut
    o_ref[...] = (x_s + dx).astype(o_ref.dtype)


def _kernel_identity(x_ref, w0_ref, b0_ref, w1_ref, b1_ref, o_ref):
    """Identity shortcut (size_in == size_out), single (rows) grid axis."""
    x = x_ref[...]
    h0 = jnp.maximum(x, 0)
    net = jnp.dot(h0, w0_ref[...],
                  preferred_element_type=jnp.float32) + b0_ref[...]
    h1 = jnp.maximum(net, 0).astype(w1_ref.dtype)
    dx = jnp.dot(h1, w1_ref[...],
                 preferred_element_type=jnp.float32) + b1_ref[...]
    o_ref[...] = (x.astype(jnp.float32) + dx).astype(o_ref.dtype)


def _kernel_shortcut_coltiled(x_ref, w0_ref, b0_ref, w1_ref, b1_ref, ws_ref,
                              o_ref, h1_ref):
    """Projection shortcut, (rows, out-columns) grid.  relu(fc_0) is cached in
    a VMEM scratch while iterating over output-column tiles."""
    j = pl.program_id(1)

    @pl.when(j == 0)
    def _():
        net = jnp.dot(jnp.maximum(x_ref[...], 0), w0_ref[...],
                      preferred_element_type=jnp.float32) + b0_ref[...]
        h1_ref[...] = jnp.maximum(net, 0).astype(h1_ref.dtype)

    dx = jnp.dot(h1_ref[...], w1_ref[...],
                 preferred_element_type=jnp.float32) + b1_ref[...]
    x_s = jnp.dot(x_ref[...], ws_ref[...], preferred_element_type=jnp.float32)
    o_ref[...] = (x_s + dx).astype(o_ref.dtype)


def _kernel_identity_coltiled(x_ref, w0_ref, b0_ref, w1_ref, b1_ref,
                              o_ref, h1_ref):
    """Identity shortcut, (rows, out-columns) grid."""
    j = pl.program_id(1)
    tn = o_ref.shape[-1]

    @pl.when(j == 0)
    def _():
        net = jnp.dot(jnp.maximum(x_ref[...], 0), w0_ref[...],
                      preferred_element_type=jnp.float32) + b0_ref[...]
        h1_ref[...] = jnp.maximum(net, 0).astype(h1_ref.dtype)

    dx = jnp.dot(h1_ref[...], w1_ref[...],
                 preferred_element_type=jnp.float32) + b1_ref[...]
    col = pl.multiple_of(j * tn, 128)                 # tn is a multiple of 128
    x_s = x_ref[:, pl.ds(col, tn)].astype(jnp.float32)
    o_ref[...] = (x_s + dx).astype(o_ref.dtype)


# ----------------------------------------------------------------------------
# Wrapper
# ----------------------------------------------------------------------------
def _round_up(n, m):
    return (n + m - 1) // m * m


def _vmem_capacity_bytes():
    """Per-core VMEM capacity; conservative fallback (v7x = 64 MiB)."""
    try:
        info = pltpu.get_tpu_info()
        cap = getattr(info, "vmem_capacity_bytes", None)
        if cap:
            return int(cap)
    except Exception:
        pass
    return 64 << 20


def prepare_resnet_block_fc_params(params, dtype=jnp.float32):
    """One-time parameter preparation (hoisted out of the forward path).

    Pads the hidden dim to a multiple of 128 with zeros (exact: zero columns
    in w0/b0 produce zero activations which meet zero rows in w1) and casts
    weights to the compute dtype.  Biases stay f32 for the f32 accumulation.
    """
    w0 = jnp.asarray(params["w0"])
    b0 = jnp.asarray(params["b0"])
    w1 = jnp.asarray(params["w1"])
    b1 = jnp.asarray(params["b1"])
    ws = params.get("ws", None)

    size_in, size_h = w0.shape
    size_out = w1.shape[1]
    if ws is None:
        assert size_in == size_out, "projection shortcut 'ws' required"
    H = _round_up(size_h, 128)

    prepared = {
        "_prepared": True,
        "w0": jnp.pad(w0, ((0, 0), (0, H - size_h))).astype(dtype),
        "b0": jnp.pad(b0, (0, H - size_h)).reshape(1, H).astype(jnp.float32),
        "w1": jnp.pad(w1, ((0, H - size_h), (0, 0))).astype(dtype),
        "b1": b1.reshape(1, size_out).astype(jnp.float32),
    }
    if ws is not None:
        prepared["ws"] = jnp.asarray(ws).astype(dtype)
    return prepared


def resnet_block_fc(x, params, *, tile_rows=None, tile_cols=None):
    """Apply ResnetBlockFC.  x: (..., size_in) -> (..., size_out).

    `params` may be raw ({"w0","b0","w1","b1"[, "ws"]}) or the output of
    prepare_resnet_block_fc_params (preferred: pad/cast happens once).
    """
    if not params.get("_prepared", False):
        params = prepare_resnet_block_fc_params(params, dtype=x.dtype)

    w0_p, b0_p, w1_p, b1_p = params["w0"], params["b0"], params["w1"], params["b1"]
    ws_p = params.get("ws", None)
    size_in, H = w0_p.shape
    size_out = w1_p.shape[1]
    assert x.shape[-1] == size_in

    dtype = x.dtype
    itemsize = jnp.dtype(dtype).itemsize
    w_itemsize = jnp.dtype(w0_p.dtype).itemsize

    lead = x.shape[:-1]
    rows = int(np.prod(lead)) if lead else 1
    x2 = x.reshape(rows, size_in)

    vmem_cap = _vmem_capacity_bytes()
    budget = vmem_cap // 2                       # working-set target (~50%)

    fixed_w_bytes = ((w0_p.size + w1_p.size +
                      (ws_p.size if ws_p is not None else 0)) * w_itemsize
                     + (b0_p.size + b1_p.size) * 4)

    # ---- column tiling decision (large feature dims / v7x VMEM budget) -----
    col_tiled = False
    tn = size_out
    if tile_cols is not None:
        tn = int(tile_cols)
        col_tiled = tn < size_out
    elif fixed_w_bytes > budget // 2 and size_out % 128 == 0 and size_out > 128:
        for cand in (512, 256, 128):
            if size_out % cand == 0 and cand < size_out:
                tn, col_tiled = cand, True
                break
    if col_tiled:
        assert size_out % tn == 0 and tn % 128 == 0, \
            "tile_cols must divide size_out and be a multiple of 128"

    # ---- VMEM budgeting (weights + double-buffered tiles + f32 temps) ------
    if col_tiled:
        fixed_bytes = (w0_p.size * w_itemsize + b0_p.size * 4
                       + 2 * (H * tn
                              + (size_in * tn if ws_p is not None else 0)) * w_itemsize
                       + 2 * tn * 4)
        per_row = (2 * (size_in + tn) * itemsize          # x / out tiles (x2 buf)
                   + H * w_itemsize                       # h1 VMEM scratch
                   + (H + 3 * tn) * 4)                    # f32 temporaries
    else:
        fixed_bytes = fixed_w_bytes
        per_row = (2 * (size_in + size_out) * itemsize
                   + (size_in + 2 * H + 2 * size_out) * 4)

    # ---- adaptive row tile --------------------------------------------------
    if tile_rows is not None:
        tm = max(8, (int(tile_rows) // 8) * 8)
    else:
        avail = max(budget - fixed_bytes, per_row * 8)
        tm = max(8, min(int(avail // per_row) // 8 * 8, 4096))
        # v7x has 2 TensorCores: keep >= 2 (>= 4 for big inputs) row steps.
        if rows > 64:
            min_steps = 4 if rows >= 4096 else 2
            tm = min(tm, max(8, _round_up(pl.cdiv(rows, min_steps), 8)))
    if tm >= rows:
        tm = rows                      # full-extent block (legal for any rows)
    grid_rows = pl.cdiv(rows, tm)      # ragged last tile handled by masked DMA

    est = fixed_bytes + tm * per_row
    vmem_limit = None
    if est > (12 << 20):               # above / near the smallest default (v5e)
        cap = max(32 << 20, min(vmem_cap - (16 << 20), (vmem_cap * 7) // 8))
        vmem_limit = int(min(max((est * 5) // 4, 32 << 20), cap))
        if vmem_limit < est:           # never cap below the estimated need
            vmem_limit = int(min(est + (4 << 20), vmem_cap - (4 << 20)))

    # ---- specs / kernel selection ------------------------------------------
    if not col_tiled:
        def inv(shape):                # grid-invariant: single buffer
            return pl.BlockSpec(shape, lambda i: (0, 0),
                                pipeline_mode=pl.Buffered(1))
        x_spec = pl.BlockSpec((tm, size_in), lambda i: (i, 0))
        o_spec = pl.BlockSpec((tm, size_out), lambda i: (i, 0))
        if ws_p is not None:
            kernel = _kernel_shortcut
            in_specs = [x_spec, inv(w0_p.shape), inv(b0_p.shape),
                        inv(w1_p.shape), inv(b1_p.shape), inv(ws_p.shape)]
            args = (x2, w0_p, b0_p, w1_p, b1_p, ws_p)
        else:
            kernel = _kernel_identity
            in_specs = [x_spec, inv(w0_p.shape), inv(b0_p.shape),
                        inv(w1_p.shape), inv(b1_p.shape)]
            args = (x2, w0_p, b0_p, w1_p, b1_p)
        grid = (grid_rows,)
        out_spec = o_spec
        scratch = []
        dims = ("parallel",)
    else:
        def inv2(shape):
            return pl.BlockSpec(shape, lambda i, j: (0, 0),
                                pipeline_mode=pl.Buffered(1))
        x_spec = pl.BlockSpec((tm, size_in), lambda i, j: (i, 0))
        o_spec = pl.BlockSpec((tm, tn), lambda i, j: (i, j))
        w1_spec = pl.BlockSpec((H, tn), lambda i, j: (0, j))
        b1_spec = pl.BlockSpec((1, tn), lambda i, j: (0, j))
        if ws_p is not None:
            kernel = _kernel_shortcut_coltiled
            ws_spec = pl.BlockSpec((size_in, tn), lambda i, j: (0, j))
            in_specs = [x_spec, inv2(w0_p.shape), inv2(b0_p.shape),
                        w1_spec, b1_spec, ws_spec]
            args = (x2, w0_p, b0_p, w1_p, b1_p, ws_p)
        else:
            kernel = _kernel_identity_coltiled
            in_specs = [x_spec, inv2(w0_p.shape), inv2(b0_p.shape),
                        w1_spec, b1_spec]
            args = (x2, w0_p, b0_p, w1_p, b1_p)
        grid = (grid_rows, size_out // tn)
        out_spec = o_spec
        scratch = [pltpu.VMEM((tm, H), w0_p.dtype)]
        dims = ("parallel", "arbitrary")

    out = pl.pallas_call(
        kernel,
        out_shape=jax.ShapeDtypeStruct((rows, size_out), dtype),
        grid_spec=pltpu.PrefetchScalarGridSpec(
            num_scalar_prefetch=0,
            grid=grid,
            in_specs=in_specs,
            out_specs=out_spec,
            scratch_shapes=scratch,
        ),
        compiler_params=pltpu.CompilerParams(
            dimension_semantics=dims,
            vmem_limit_bytes=vmem_limit),
    )(*args)

    return out.reshape(*lead, size_out)


# ----------------------------------------------------------------------------
# Init / reference helpers (for the self-test)
# ----------------------------------------------------------------------------
def init_resnet_block_fc_params(key, size_in, size_out=None, size_h=None):
    """Shapes/init matching the PyTorch module (weights stored (in, out))."""
    if size_out is None:
        size_out = size_in
    if size_h is None:
        size_h = min(size_in, size_out)

    k0, kb0, kb1, ks = jax.random.split(key, 4)

    def uniform_fan_in(k, fan_in, shape):
        bound = 1.0 / np.sqrt(fan_in)
        return jax.random.uniform(k, shape, jnp.float32, -bound, bound)

    params = {
        "w0": uniform_fan_in(k0, size_in, (size_in, size_h)),
        "b0": uniform_fan_in(kb0, size_in, (size_h,)),
        "w1": jnp.zeros((size_h, size_out), jnp.float32),   # nn.init.zeros_
        "b1": uniform_fan_in(kb1, size_h, (size_out,)),
    }
    if size_in != size_out:
        params["ws"] = uniform_fan_in(ks, size_in, (size_in, size_out))
    return params


def _reference(x, params):
    """Pure-JAX f32 reference of the PyTorch forward."""
    h = jnp.maximum(x, 0.0)
    net = h @ params["w0"] + params["b0"]
    dx = jnp.maximum(net, 0.0) @ params["w1"] + params["b1"]
    x_s = x @ params["ws"] if "ws" in params else x
    return x_s + dx


if __name__ == "__main__":
    key = jax.random.PRNGKey(0)
    kx, kp, kp2, kp3, kw1, kp4, kp5, kx2 = jax.random.split(key, 8)
    TOL = dict(rtol=1e-2, atol=1e-2)   # covers MXU default f32 matmul precision

    # 1) projection shortcut: 32 -> 64 (size_h=32), f32, module init.
    size_in, size_out = 32, 64
    x = jax.random.normal(kx, (2, 8, size_in), jnp.float32)
    params = init_resnet_block_fc_params(kp, size_in, size_out)
    out = jax.block_until_ready(resnet_block_fc(x, params))
    ref = _reference(x.reshape(-1, size_in), params).reshape(2, 8, size_out)
    np.testing.assert_allclose(np.asarray(out), np.asarray(ref), **TOL)

    # 1b) hoisted one-time param preparation (no per-call padding).
    prepared = prepare_resnet_block_fc_params(params, dtype=x.dtype)
    out_p = jax.block_until_ready(resnet_block_fc(x, prepared))
    np.testing.assert_allclose(np.asarray(out_p), np.asarray(ref), **TOL)

    # 2) identity shortcut (32 -> 32): plain in-kernel residual add.
    params_id = init_resnet_block_fc_params(kp2, size_in)
    out_id = jax.block_until_ready(resnet_block_fc(x, params_id))
    ref_id = _reference(x.reshape(-1, size_in), params_id).reshape(2, 8, size_in)
    np.testing.assert_allclose(np.asarray(out_id), np.asarray(ref_id), **TOL)

    # 3) identity, lane-aligned (128 -> 128), ragged row tiling (20 rows,
    #    tile_rows=8 -> grid of 3 with a masked boundary tile).
    x3 = jax.random.normal(kx, (2, 10, 128), jnp.float32)
    params3 = init_resnet_block_fc_params(kp3, 128)
    out3 = jax.block_until_ready(resnet_block_fc(x3, params3, tile_rows=8))
    ref3 = _reference(x3.reshape(-1, 128), params3).reshape(2, 10, 128)
    np.testing.assert_allclose(np.asarray(out3), np.asarray(ref3), **TOL)

    # 4) "trained" weights: non-zero fc_1 exercises the full fc_0 -> fc_1 chain.
    params_tr = dict(params)
    params_tr["w1"] = 0.1 * jax.random.normal(kw1, (size_in, size_out), jnp.float32)
    out_tr = jax.block_until_ready(resnet_block_fc(x, params_tr))
    ref_tr = _reference(x.reshape(-1, size_in), params_tr).reshape(2, 8, size_out)
    np.testing.assert_allclose(np.asarray(out_tr), np.asarray(ref_tr), **TOL)

    # 5) bf16 I/O (bf16 DMA, f32 accumulation; relu(fc_0) rounded to bf16
    #    before fc_1 is a deliberate precision trade vs the f32 reference).
    xb = x.astype(jnp.bfloat16)
    params_b = jax.tree_util.tree_map(lambda a: a.astype(jnp.bfloat16), params_tr)
    out_b = jax.block_until_ready(resnet_block_fc(xb, params_b))
    params_b32 = jax.tree_util.tree_map(lambda a: a.astype(jnp.float32), params_b)
    ref_b = _reference(xb.astype(jnp.float32).reshape(-1, size_in),
                       params_b32).reshape(2, 8, size_out)
    np.testing.assert_allclose(np.asarray(out_b.astype(jnp.float32)),
                               np.asarray(ref_b), rtol=5e-2, atol=5e-2)

    # 6) column-tiled projection path (forced via tile_cols to exercise the
    #    large-D / v7x code path at small shapes): 64 -> 256, tn=128.
    x6 = jax.random.normal(kx2, (2, 24, 64), jnp.float32)
    params6 = init_resnet_block_fc_params(kp4, 64, 256)
    params6["w1"] = 0.05 * jax.random.normal(kw1, (64, 256), jnp.float32)
    out6 = jax.block_until_ready(resnet_block_fc(x6, params6, tile_cols=128))
    ref6 = _reference(x6.reshape(-1, 64), params6).reshape(2, 24, 256)
    np.testing.assert_allclose(np.asarray(out6), np.asarray(ref6), **TOL)

    # 7) column-tiled identity path: 256 -> 256, tn=128.
    x7 = jax.random.normal(kx2, (2, 16, 256), jnp.float32)
    params7 = init_resnet_block_fc_params(kp5, 256)
    params7["w1"] = 0.05 * jax.random.normal(kw1, (256, 256), jnp.float32)
    out7 = jax.block_until_ready(resnet_block_fc(x7, params7, tile_cols=128))
    ref7 = _reference(x7.reshape(-1, 256), params7).reshape(2, 16, 256)
    np.testing.assert_allclose(np.asarray(out7), np.asarray(ref7), **TOL)

    print("KERNEL_OK")
</pallas_src>

<mosaic_0001>
module attributes {stable_mosaic.version = 11 : i64} {
  func.func @_kernel_shortcut(%arg0: i32, %arg1: memref<16x32xf32, #tpu.memory_space<vmem>>, %arg2: memref<32x128xf32, #tpu.memory_space<vmem>>, %arg3: memref<1x128xf32, #tpu.memory_space<vmem>>, %arg4: memref<128x64xf32, #tpu.memory_space<vmem>>, %arg5: memref<1x64xf32, #tpu.memory_space<vmem>>, %arg6: memref<32x64xf32, #tpu.memory_space<vmem>>, %arg7: memref<16x64xf32, #tpu.memory_space<vmem>>) attributes {dimension_semantics = [#tpu.dimension_semantics<parallel>], iteration_bounds = array<i64: 1>, scalar_prefetch = 0 : i64, scratch_operands = 0 : i64, tpu.core_type = #tpu.core_type<tc>, window_params = [{transform_indices = @transform_0, window_bounds = array<i64: 16, 32>}, {pipeline_mode = #tpu.pipeline_mode<synchronous>, transform_indices = @transform_1, window_bounds = array<i64: 32, 128>}, {pipeline_mode = #tpu.pipeline_mode<synchronous>, transform_indices = @transform_2, window_bounds = array<i64: 1, 128>}, {pipeline_mode = #tpu.pipeline_mode<synchronous>, transform_indices = @transform_3, window_bounds = array<i64: 128, 64>}, {pipeline_mode = #tpu.pipeline_mode<synchronous>, transform_indices = @transform_4, window_bounds = array<i64: 1, 64>}, {pipeline_mode = #tpu.pipeline_mode<synchronous>, transform_indices = @transform_5, window_bounds = array<i64: 32, 64>}, {transform_indices = @transform_6, window_bounds = array<i64: 16, 64>}]} {
    %c0 = arith.constant 0 : index
    %c0_0 = arith.constant 0 : index
    %0 = vector.load %arg1[%c0, %c0_0] : memref<16x32xf32, #tpu.memory_space<vmem>>, vector<16x32xf32>
    %cst = arith.constant 0.000000e+00 : f32
    %1 = vector.broadcast %cst : f32 to vector<16x32xf32>
    %2 = arith.maximumf %0, %1 : vector<16x32xf32>
    %c0_1 = arith.constant 0 : index
    %c0_2 = arith.constant 0 : index
    %3 = vector.load %arg2[%c0_1, %c0_2] : memref<32x128xf32, #tpu.memory_space<vmem>>, vector<32x128xf32>
    %cst_3 = arith.constant dense<0.000000e+00> : vector<16x128xf32>
    %4 = tpu.matmul %2, %3, %cst_3 {dimension_numbers = #tpu.dot_dimension_numbers<[1], [0], [0], [1], [0, 0, 1, 1], [], []>} : vector<16x32xf32>, vector<32x128xf32>, vector<16x128xf32> -> vector<16x128xf32>
    %c0_4 = arith.constant 0 : index
    %c0_5 = arith.constant 0 : index
    %5 = vector.load %arg3[%c0_4, %c0_5] : memref<1x128xf32, #tpu.memory_space<vmem>>, vector<1x128xf32>
    %6 = vector.broadcast %5 : vector<1x128xf32> to vector<16x128xf32>
    %7 = arith.addf %4, %6 : vector<16x128xf32>
    %cst_6 = arith.constant 0.000000e+00 : f32
    %8 = vector.broadcast %cst_6 : f32 to vector<16x128xf32>
    %9 = arith.maximumf %7, %8 : vector<16x128xf32>
    %c0_7 = arith.constant 0 : index
    %c0_8 = arith.constant 0 : index
    %10 = vector.load %arg4[%c0_7, %c0_8] : memref<128x64xf32, #tpu.memory_space<vmem>>, vector<128x64xf32>
    %cst_9 = arith.constant dense<0.000000e+00> : vector<16x64xf32>
    %11 = tpu.matmul %9, %10, %cst_9 {dimension_numbers = #tpu.dot_dimension_numbers<[1], [0], [0], [1], [0, 0, 1, 1], [], []>} : vector<16x128xf32>, vector<128x64xf32>, vector<16x64xf32> -> vector<16x64xf32>
    %c0_10 = arith.constant 0 : index
    %c0_11 = arith.constant 0 : index
    %12 = vector.load %arg5[%c0_10, %c0_11] : memref<1x64xf32, #tpu.memory_space<vmem>>, vector<1x64xf32>
    %13 = vector.broadcast %12 : vector<1x64xf32> to vector<16x64xf32>
    %14 = arith.addf %11, %13 : vector<16x64xf32>
    %c0_12 = arith.constant 0 : index
    %c0_13 = arith.constant 0 : index
    %15 = vector.load %arg6[%c0_12, %c0_13] : memref<32x64xf32, #tpu.memory_space<vmem>>, vector<32x64xf32>
    %cst_14 = arith.constant dense<0.000000e+00> : vector<16x64xf32>
    %16 = tpu.matmul %0, %15, %cst_14 {dimension_numbers = #tpu.dot_dimension_numbers<[1], [0], [0], [1], [0, 0, 1, 1], [], []>} : vector<16x32xf32>, vector<32x64xf32>, vector<16x64xf32> -> vector<16x64xf32>
    %17 = arith.addf %16, %14 : vector<16x64xf32>
    %c0_15 = arith.constant 0 : index
    %c0_16 = arith.constant 0 : index
    %18 = vector.load %arg7[%c0_15, %c0_16] : memref<16x64xf32, #tpu.memory_space<vmem>>, vector<16x64xf32>
    tpu.vector_store %arg7[%c0_15, %c0_16], %17 {strides = array<i32>} : memref<16x64xf32, #tpu.memory_space<vmem>>, vector<16x64xf32>,
    return
  }
  func.func @transform_0(%arg0: i32) -> (i32, i32) {
    %c0_i32 = arith.constant 0 : i32
    %c0_i32_0 = arith.constant 0 : i32
    return %arg0, %c0_i32 : i32, i32
  }
  func.func @transform_1(%arg0: i32) -> (i32, i32) {
    %c0_i32 = arith.constant 0 : i32
    %c0_i32_0 = arith.constant 0 : i32
    %c0_i32_1 = arith.constant 0 : i32
    return %c0_i32, %c0_i32_0 : i32, i32
  }
  func.func @transform_2(%arg0: i32) -> (i32, i32) {
    %c0_i32 = arith.constant 0 : i32
    %c0_i32_0 = arith.constant 0 : i32
    %c0_i32_1 = arith.constant 0 : i32
    return %c0_i32, %c0_i32_0 : i32, i32
  }
  func.func @transform_3(%arg0: i32) -> (i32, i32) {
    %c0_i32 = arith.constant 0 : i32
    %c0_i32_0 = arith.constant 0 : i32
    %c0_i32_1 = arith.constant 0 : i32
    return %c0_i32, %c0_i32_0 : i32, i32
  }
  func.func @transform_4(%arg0: i32) -> (i32, i32) {
    %c0_i32 = arith.constant 0 : i32
    %c0_i32_0 = arith.constant 0 : i32
    %c0_i32_1 = arith.constant 0 : i32
    return %c0_i32, %c0_i32_0 : i32, i32
  }
  func.func @transform_5(%arg0: i32) -> (i32, i32) {
    %c0_i32 = arith.constant 0 : i32
    %c0_i32_0 = arith.constant 0 : i32
    %c0_i32_1 = arith.constant 0 : i32
    return %c0_i32, %c0_i32_0 : i32, i32
  }
  func.func @transform_6(%arg0: i32) -> (i32, i32) {
    %c0_i32 = arith.constant 0 : i32
    %c0_i32_0 = arith.constant 0 : i32
    return %arg0, %c0_i32 : i32, i32
  }
}

</mosaic_0001>

<bundles_post_ra>
// kernel: tpu_custom_call.1
= control target key start
LH: loop header
LB: loop body
LE: loop exit
PB: predicated region body
PF: predicated region fallthrough
CT: control target
= control target key end

     0   :  { %vm36_vm0 = vcmask 261120   ;;  %s345_s0 = inlined_call_operand.vmem [shape: f32[16,32], index: 0, kind: input, shape index: {}]   ;;  %s346_s1 = inlined_call_operand.vmem [shape: f32[32,128], index: 1, kind: input, shape index: {}]   ;;  %s347_s2 = inlined_call_operand.vmem [shape: f32[1,128], index: 2, kind: input, shape index: {}]   ;;  %s348_s3 = inlined_call_operand.vmem [shape: f32[128,64], index: 3, kind: input, shape index: {}]   ;;  %s349_s4 = inlined_call_operand.vmem [shape: f32[1,64], index: 4, kind: input, shape index: {}]   ;;  %s350_s5 = inlined_call_operand.vmem [shape: f32[32,64], index: 5, kind: input, shape index: {}]   ;;  %s351_s6 = inlined_call_operand.hbm [shape: f32[16,64], index: 6, kind: output, shape index: {}]  }
   0x1   :  { %v31_v0 = vld [vmem:[%s346_s1 + $0x18] sm:$0xff]  ;;  %v30_v1 = vld [vmem:[%s346_s1 + $0x10] sm:$0xff]  ;;  %v24_v2 = vld [vmem:[%s345_s0] sm:$0xff] }
   0x2   :  { %55 = vmatpush.msra.mxu0 %v31_v0  ;;  %v29_v3 = vld [vmem:[%s346_s1 + $0x8] sm:$0xff]  ;;  %v83_v4 = vld [vmem:[%s348_s3 + $0x78] sm:$0xff]  ;;  %v82_v5 = vld [vmem:[%s348_s3 + $0x70] sm:$0xff]  ;;  %v26_v7 = vmax.f32 %v24_v2, 0.0 }
   0x3   :  { %88 = vmatpush.msra.mxu1 %v83_v4  ;;  %v28_v6 = vld [vmem:[%s346_s1] sm:$0xff]  ;;  %v81_v8 = vld [vmem:[%s348_s3 + $0x68] sm:$0xff]  ;;  %169 = vmatpush.msra.mxu3 %v83_v4  ;;  %v114_v9 = vld [vmem:[%s350_s5 + $0x18] sm:$0xff] }
   0x4   :  { %56 = vmatpush.msra.mxu0 %v30_v1  ;;  %v80_v10 = vld [vmem:[%s348_s3 + $0x60] sm:$0xff]  ;;  %133 = vmatpush.msra.mxu2 %v114_v9  ;;  %v113_v11 = vld [vmem:[%s350_s5 + $0x10] sm:$0xff]  ;;  %v79_v12 = vld [vmem:[%s348_s3 + $0x58] sm:$0xff] }
   0x5   :  { %89 = vmatpush.msra.mxu1 %v82_v5  ;;  %170 = vmatpush.msra.mxu3 %v82_v5  ;;  %v112_v13 = vld [vmem:[%s350_s5 + $0x8] sm:$0xff] }
   0x6   :  { %57 = vmatpush.msra.mxu0 %v29_v3 }
   0x7   :  { %90 = vmatpush.msra.mxu1 %v81_v8  ;;  %171 = vmatpush.msra.mxu3 %v81_v8 }
   0x8   :  { %58 = vmatpush.msra.mxu0 %v28_v6 }
   0x9   :  { %165 = vmatmul.msk.f32.vlgmr.msra.gmra.mxu0 %vm36_vm0, %v26_v7 }
   0xa   :  { %11 = vsyncpa [#allocation3], 0  ;;  %v25_v14 = vld [vmem:[%s345_s0 + $0x8] sm:$0xff]  ;;  %91 = vmatpush.msra.mxu1 %v80_v10  ;;  %134 = vmatpush.msra.mxu2 %v113_v11  ;;  %v78_v15 = vld [vmem:[%s348_s3 + $0x50] sm:$0xff]  ;;  %vm144_vm1 = vcmask 523264   ;;  %s153_s27 = sshll.u32 %s351_s6, 4  ;;  %s154_s27 = int_to_ptr.hbm [resolvable:$true] %s153_s27 }
   0xb   :  { %172 = vmatpush.msra.mxu3 %v80_v10  ;;  %v27_v16 = vmax.f32 %v25_v14, 0.0  ;;  %v77_v17 = vld [vmem:[%s348_s3 + $0x48] sm:$0xff]  ;;  %v76_v18 = vld [vmem:[%s348_s3 + $0x40] sm:$0xff]  ;;  %v75_v19 = vld [vmem:[%s348_s3 + $0x38] sm:$0xff]  ;;  %s218_s28 = smov 8  }
   0xc   :  { %92 = vmatpush.msra.mxu1 %v79_v12  ;;  %135 = vmatpush.msra.mxu2 %v112_v13  ;;  %v74_v20 = vld [vmem:[%s348_s3 + $0x30] sm:$0xff]  ;;  %v73_v21 = vld [vmem:[%s348_s3 + $0x28] sm:$0xff]  ;;  %v72_v22 = vld [vmem:[%s348_s3 + $0x20] sm:$0xff] }
   0xd   :  { %173 = vmatpush.msra.mxu3 %v79_v12  ;;  %v71_v23 = vld [vmem:[%s348_s3 + $0x18] sm:$0xff]  ;;  %v70_v24 = vld [vmem:[%s348_s3 + $0x10] sm:$0xff]  ;;  %v111_v25 = vld [vmem:[%s350_s5] sm:$0xff] }
   0xe   :  { %93 = vmatpush.msra.mxu1 %v78_v15  ;;  %136 = vmatpush.msra.mxu2 %v111_v25  ;;  %v69_v26 = vld [vmem:[%s348_s3 + $0x8] sm:$0xff]  ;;  %v68_v27 = vld [vmem:[%s348_s3] sm:$0xff]  ;;  %s216_s3 = smov [#allocation2]  }
   0xf   :  { %174 = vmatpush.msra.mxu3 %v78_v15  ;;  %167 = vmatmul.msk.f32.vlgmr.msra.gmra.mxu2 %vm36_vm0, %v24_v2  ;;  %v188_v28 = vld [vmem:[%s347_s2] ss:$0 sm:$0xff]  ;;  %s151_s2 = sshll.u32 %s216_s3, 4  ;;  %s152_s2 = int_to_ptr.vmem [resolvable:$true] %s151_s2 }
  0x10   :  { %94 = vmatpush.msra.mxu1 %v77_v17  ;;  %v189_v35 = vld [vmem:[%s349_s4] ss:$0 sm:$0xff]  ;;  %s217_s4 = smov 128  }
  0x11   :  { %166 = vmatmul.msk.f32.gmra.mxu0 %vm36_vm0, %v27_v16  ;;  %175 = vmatpush.msra.mxu3 %v77_v17 }
  0x12   :  { %95 = vmatpush.msra.mxu1 %v76_v18 }
  0x13   :  { %176 = vmatpush.msra.mxu3 %v76_v18 }
  0x14   :  { %96 = vmatpush.msra.mxu1 %v75_v19 }
  0x15   :  { %177 = vmatpush.msra.mxu3 %v75_v19 }
  0x16   :  { %97 = vmatpush.msra.mxu1 %v74_v20 }
  0x17   :  { %178 = vmatpush.msra.mxu3 %v74_v20  ;;  %168 = vmatmul.msk.f32.gmra.mxu2 %vm36_vm0, %v25_v14 }
  0x18   :  { %98 = vmatpush.msra.mxu1 %v73_v21 }
  0x19   :  { %179 = vmatpush.msra.mxu3 %v73_v21 }
  0x1a   :  { %99 = vmatpush.msra.mxu1 %v72_v22 }
  0x1b   :  { %180 = vmatpush.msra.mxu3 %v72_v22 }
  0x1c   :  { %100 = vmatpush.msra.mxu1 %v71_v23 }
  0x1d   :  { %181 = vmatpush.msra.mxu3 %v71_v23 }
  0x1e   :  { %101 = vmatpush.msra.mxu1 %v70_v24 }
  0x1f   :  { %182 = vmatpush.msra.mxu3 %v70_v24 }
  0x20   :  { %102 = vmatpush.msra.mxu1 %v69_v26 }
  0x21   :  { %183 = vmatpush.msra.mxu3 %v69_v26 }
  0x22   :  { %103 = vmatpush.msra.mxu1 %v68_v27 }
  0x23   :  { %184 = vmatpush.msra.mxu3 %v68_v27 }
  0x86   :  { %v60_v29 = vpop.f32.mrf.mxu0 }
  0x87   :  { %v61_v30 = vadd.f32 %v188_v28, %v60_v29 }
  0x89   :  { %v66_v31 = vmax.f32 %v61_v30, 0.0 }
  0x8b   :  { %104 = vmatmul.f32.vlgmr.msra.gmra.mxu1 %v66_v31 }
  0x8e   :  { %v63_v32 = vpop.f32.mrf.mxu0 }
  0x8f   :  { %v64_v33 = vadd.f32 %v188_v28, %v63_v32 }
  0x91   :  { %v67_v34 = vmax.f32 %v64_v33, 0.0 }
  0x92   :  { %v138_v37 = vpop.f32.mrf.mxu2 }
  0x93   :  { %107 = vmatmul.f32.vlgmr.msra.gmra.mxu3 %v67_v34 }
  0x9a   :  { %v141_v41 = vpop.f32.mrf.mxu2 }
 0x108   :  { %v105_v36 = vpop.f32.mrf.mxu1 }
 0x109   :  { %v106_v38 = vadd.f32 %v189_v35, %v105_v36 }
 0x10b   :  { %v139_v39 = vadd.f32 %v138_v37, %v106_v38 }
 0x10d   :  { %145 = vst.msk [vmem:[#allocation2] sm:$0xff] %vm144_vm1, %v139_v39 }
 0x116   :  { %v108_v40 = vpop.f32.mrf.mxu3 }
 0x117   :  { %v109_v42 = vadd.f32 %v189_v35, %v108_v40 }
 0x119   :  { %v142_v43 = vadd.f32 %v141_v41, %v109_v42 }
 0x11b   :  { %146 = vst.msk [vmem:[#allocation2 + $0x8] sm:$0xff] %vm144_vm1, %v142_v43 }
 0x11c   :  { %159 = dma.vmem_to_hbm [thread:$0]  %s152_s2, 256, %s154_s27, [#allocation3], %s217_s4, %s217_s4, %s218_s28  }
 0x11d   :  { %214 = dma.done.wait [#allocation3], 256  }
 0x11e   :  { %215 = vsyncadd [#allocation3], 4294967040 }
 0x11f   :  { %164 = vsyncpa [#allocation3], 1 }

</bundles_post_ra>
